<compile_context>
chip_gen: v6e
topology: v6e:2x2x1
jax: 0.10.0
libtpu: 0.0.40
codegen_flags: <defaults>
</compile_context>

<pallas_src>
import jax
import jax.numpy as jnp
from jax import lax
from jax.experimental import pallas as pl
from jax.experimental.pallas import tpu as pltpu

NEG_SLOPE = 0.01  # PyTorch nn.LeakyReLU default negative_slope


def _leaky_relu(x):
    return jnp.where(x > 0, x, NEG_SLOPE * x)


def discriminator_kernel(x_ref, w1_ref, b1_ref, w2_ref, b2_ref, w3_ref, b3_ref,
                         out_ref):
    """One batch tile: (Linear + LeakyReLU) x2 -> Linear(., 1).

    x_ref : (TB, d0) f32   -- streamed from HBM, double-buffered by Pallas;
                              cast to bf16 here (VPU cast is free in this regime)
    w1/w2 : bf16 weights, resident in VMEM (constant index_map)
    b1/b2 : (1, d)  f32
    w3    : (1, d2) bf16   -- final-layer weight stored as a row
    b3    : (1, 1)  f32    -- scalar in SMEM
    out   : (1, TB) f32    -- batch mapped to the lane axis (lane-dense stores)
    """
    x = x_ref[...].astype(jnp.bfloat16)                               # in-kernel cast

    h = jnp.dot(x, w1_ref[...], preferred_element_type=jnp.float32)   # (TB, d1) f32
    h = _leaky_relu(h + b1_ref[...])

    h = jnp.dot(h.astype(jnp.bfloat16), w2_ref[...],
                preferred_element_type=jnp.float32)                    # (TB, d2) f32
    h = _leaky_relu(h + b2_ref[...])

    # Final (d2 -> 1) layer: contract d2 and land the batch on the lane axis,
    # so the output store is an unmasked lane-dense (1, TB) row instead of a
    # masked (TB, 1) column, and the matmul has N=TB rather than N=1.
    logits = lax.dot_general(
        w3_ref[...], h.astype(jnp.bfloat16),
        dimension_numbers=(((1,), (1,)), ((), ())),
        preferred_element_type=jnp.float32)                            # (1, TB)

    out_ref[...] = (logits + b3_ref[0, 0]).astype(out_ref.dtype)


def _round_up(x, m):
    return ((x + m - 1) // m) * m


def _pick_tile(batch, tile_b):
    """Pick a batch tile: big (amortize per-step overhead), clamped for small B,
    and >= 2 grid steps when there is enough work (v7x has 2 TensorCores)."""
    tb = min(tile_b, _round_up(batch, 8))          # no 128x waste at B=8
    if pl.cdiv(batch, tb) < 2 and batch >= 256:    # split for the 2nd TC on v7x
        tb = _round_up(pl.cdiv(batch, 2), 128)
    return tb


def discriminator_forward(images, params, *, tile_b=1024):
    """images: (B, d0) float32.  Returns logits: (B, 1) float32."""
    w1, b1 = params["w1"], params["b1"]
    w2, b2 = params["w2"], params["b2"]
    w3, b3 = params["w3"], params["b3"]

    B, d0 = images.shape
    d1 = w1.shape[1]
    d2 = w2.shape[1]

    tb = _pick_tile(B, tile_b)
    n_tiles = pl.cdiv(B, tb)
    out_cols = n_tiles * tb  # padded only on the tiny output row, never on x

    # No wrapper-side pad of x: the ragged last tile reads OOB rows (unspecified
    # data); their results go to output columns >= B, which are sliced off.
    def resident(shape):
        return pl.BlockSpec(shape, lambda i: (0,) * len(shape))

    cost = pl.CostEstimate(
        flops=2 * B * (d0 * d1 + d1 * d2 + d2),
        transcendentals=0,
        bytes_accessed=(B * d0 * 4 + B * 4
                        + (d0 * d1 + d1 * d2 + d2) * 2
                        + (d1 + d2 + 1) * 4),
    )

    out = pl.pallas_call(
        discriminator_kernel,
        out_shape=jax.ShapeDtypeStruct((1, out_cols), jnp.float32),
        grid=(n_tiles,),
        in_specs=[
            pl.BlockSpec((tb, d0), lambda i: (i, 0)),            # x: streamed f32
            resident(w1.shape), resident(b1.shape),              # layer 1
            resident(w2.shape), resident(b2.shape),              # layer 2
            resident(w3.shape),                                  # layer 3 weight
            pl.BlockSpec(memory_space=pltpu.MemorySpace.SMEM),   # b3 scalar
        ],
        out_specs=pl.BlockSpec((1, tb), lambda i: (0, i)),
        compiler_params=pltpu.CompilerParams(
            dimension_semantics=("parallel",)),
        cost_estimate=cost,
    )(images, w1, b1, w2, b2, w3, b3)

    return out[0, :B].reshape(B, 1)


def init_params(key, structure):
    """Deterministic init mirroring nn.Linear shapes.

    PyTorch Linear(i, o) stores weight (o, i); we store the transpose (i, o)
    (and the final layer as a (1, d2) row) so the kernel computes x @ W.
    Weights are bf16 for the MXU; biases stay f32.
    """
    d0, d1, d2 = structure
    ks = jax.random.split(key, 6)

    def uinit(k, fan_in, shape):
        bound = 1.0 / jnp.sqrt(jnp.float32(fan_in))
        return jax.random.uniform(k, shape, jnp.float32, -bound, bound)

    return {
        "w1": uinit(ks[0], d0, (d0, d1)).astype(jnp.bfloat16),
        "b1": uinit(ks[1], d0, (1, d1)),
        "w2": uinit(ks[2], d1, (d1, d2)).astype(jnp.bfloat16),
        "b2": uinit(ks[3], d1, (1, d2)),
        "w3": uinit(ks[4], d2, (1, d2)).astype(jnp.bfloat16),
        "b3": uinit(ks[5], d2, (1, 1)),
    }


def reference_forward(images, p):
    """Pure-JAX reference using the same bf16-matmul / f32-accumulate math."""
    x = images.astype(jnp.bfloat16)
    h = _leaky_relu(
        jnp.dot(x, p["w1"], preferred_element_type=jnp.float32) + p["b1"])
    h = _leaky_relu(
        jnp.dot(h.astype(jnp.bfloat16), p["w2"],
                preferred_element_type=jnp.float32) + p["b2"])
    logits = jnp.dot(h.astype(jnp.bfloat16), p["w3"].T,
                     preferred_element_type=jnp.float32)
    return logits + p["b3"][0, 0]


if __name__ == "__main__":
    key = jax.random.PRNGKey(0)
    k_img, k_par = jax.random.split(key)

    disc_structure = [128, 64, 32]   # args.disc_structure, [0] == args.image_size
    batch = 8

    images = jax.random.normal(k_img, (batch, disc_structure[0]), jnp.float32)
    params = init_params(k_par, disc_structure)

    logits = discriminator_forward(images, params)
    logits = jax.block_until_ready(logits)

    ref = reference_forward(images, params)
    assert logits.shape == (batch, 1)
    assert jnp.allclose(logits, ref, atol=1e-3, rtol=1e-3), float(
        jnp.max(jnp.abs(logits - ref)))

    # Exercise the large-batch / ragged-tail path (>=2 grid steps, no jnp.pad).
    big = 1000
    images_big = jax.random.normal(k_img, (big, disc_structure[0]), jnp.float32)
    logits_big = jax.block_until_ready(discriminator_forward(images_big, params))
    ref_big = reference_forward(images_big, params)
    assert logits_big.shape == (big, 1)
    assert jnp.allclose(logits_big, ref_big, atol=1e-3, rtol=1e-3), float(
        jnp.max(jnp.abs(logits_big - ref_big)))

    print("KERNEL_OK")
</pallas_src>

<mosaic_0001>
module attributes {stable_mosaic.version = 11 : i64} {
  func.func @discriminator_kernel(%arg0: i32, %arg1: memref<8x128xf32, #tpu.memory_space<vmem>>, %arg2: memref<128x64xbf16, #tpu.memory_space<vmem>>, %arg3: memref<1x64xf32, #tpu.memory_space<vmem>>, %arg4: memref<64x32xbf16, #tpu.memory_space<vmem>>, %arg5: memref<1x32xf32, #tpu.memory_space<vmem>>, %arg6: memref<1x32xbf16, #tpu.memory_space<vmem>>, %arg7: memref<1x1xf32, #tpu.memory_space<smem>>, %arg8: memref<1x8xf32, #tpu.memory_space<vmem>>) attributes {dimension_semantics = [#tpu.dimension_semantics<parallel>], iteration_bounds = array<i64: 1>, scalar_prefetch = 0 : i64, scratch_operands = 0 : i64, tpu.core_type = #tpu.core_type<tc>, window_params = [{transform_indices = @transform_0, window_bounds = array<i64: 8, 128>}, {pipeline_mode = #tpu.pipeline_mode<synchronous>, transform_indices = @transform_1, window_bounds = array<i64: 128, 64>}, {pipeline_mode = #tpu.pipeline_mode<synchronous>, transform_indices = @transform_2, window_bounds = array<i64: 1, 64>}, {pipeline_mode = #tpu.pipeline_mode<synchronous>, transform_indices = @transform_3, window_bounds = array<i64: 64, 32>}, {pipeline_mode = #tpu.pipeline_mode<synchronous>, transform_indices = @transform_4, window_bounds = array<i64: 1, 32>}, {pipeline_mode = #tpu.pipeline_mode<synchronous>, transform_indices = @transform_5, window_bounds = array<i64: 1, 32>}, {transform_indices = @transform_6, window_bounds = array<i64: 1, 1>}, {transform_indices = @transform_7, window_bounds = array<i64: 1, 8>}]} {
    %c0 = arith.constant 0 : index
    %c0_0 = arith.constant 0 : index
    %0 = vector.load %arg1[%c0, %c0_0] : memref<8x128xf32, #tpu.memory_space<vmem>>, vector<8x128xf32>
    %1 = arith.truncf %0 : vector<8x128xf32> to vector<8x128xbf16>
    %c0_1 = arith.constant 0 : index
    %c0_2 = arith.constant 0 : index
    %2 = vector.load %arg2[%c0_1, %c0_2] : memref<128x64xbf16, #tpu.memory_space<vmem>>, vector<128x64xbf16>
    %cst = arith.constant dense<0.000000e+00> : vector<8x64xf32>
    %3 = tpu.matmul %1, %2, %cst {dimension_numbers = #tpu.dot_dimension_numbers<[1], [0], [0], [1], [0, 0, 1, 1], [], []>} : vector<8x128xbf16>, vector<128x64xbf16>, vector<8x64xf32> -> vector<8x64xf32>
    %c0_3 = arith.constant 0 : index
    %c0_4 = arith.constant 0 : index
    %4 = vector.load %arg3[%c0_3, %c0_4] : memref<1x64xf32, #tpu.memory_space<vmem>>, vector<1x64xf32>
    %5 = vector.broadcast %4 : vector<1x64xf32> to vector<8x64xf32>
    %6 = arith.addf %3, %5 : vector<8x64xf32>
    %cst_5 = arith.constant 0.000000e+00 : f32
    %7 = vector.broadcast %cst_5 : f32 to vector<8x64xf32>
    %8 = arith.cmpf ogt, %6, %7 : vector<8x64xf32>
    %cst_6 = arith.constant 0.00999999977 : f32
    %9 = vector.broadcast %cst_6 : f32 to vector<8x64xf32>
    %10 = arith.mulf %9, %6 : vector<8x64xf32>
    %11 = arith.select %8, %6, %10 : vector<8x64xi1>, vector<8x64xf32>
    %12 = arith.truncf %11 : vector<8x64xf32> to vector<8x64xbf16>
    %c0_7 = arith.constant 0 : index
    %c0_8 = arith.constant 0 : index
    %13 = vector.load %arg4[%c0_7, %c0_8] : memref<64x32xbf16, #tpu.memory_space<vmem>>, vector<64x32xbf16>
    %cst_9 = arith.constant dense<0.000000e+00> : vector<8x32xf32>
    %14 = tpu.matmul %12, %13, %cst_9 {dimension_numbers = #tpu.dot_dimension_numbers<[1], [0], [0], [1], [0, 0, 1, 1], [], []>} : vector<8x64xbf16>, vector<64x32xbf16>, vector<8x32xf32> -> vector<8x32xf32>
    %c0_10 = arith.constant 0 : index
    %c0_11 = arith.constant 0 : index
    %15 = vector.load %arg5[%c0_10, %c0_11] : memref<1x32xf32, #tpu.memory_space<vmem>>, vector<1x32xf32>
    %16 = vector.broadcast %15 : vector<1x32xf32> to vector<8x32xf32>
    %17 = arith.addf %14, %16 : vector<8x32xf32>
    %cst_12 = arith.constant 0.000000e+00 : f32
    %18 = vector.broadcast %cst_12 : f32 to vector<8x32xf32>
    %19 = arith.cmpf ogt, %17, %18 : vector<8x32xf32>
    %cst_13 = arith.constant 0.00999999977 : f32
    %20 = vector.broadcast %cst_13 : f32 to vector<8x32xf32>
    %21 = arith.mulf %20, %17 : vector<8x32xf32>
    %22 = arith.select %19, %17, %21 : vector<8x32xi1>, vector<8x32xf32>
    %c0_14 = arith.constant 0 : index
    %c0_15 = arith.constant 0 : index
    %23 = vector.load %arg6[%c0_14, %c0_15] : memref<1x32xbf16, #tpu.memory_space<vmem>>, vector<1x32xbf16>
    %24 = arith.truncf %22 : vector<8x32xf32> to vector<8x32xbf16>
    %cst_16 = arith.constant dense<0.000000e+00> : vector<1x8xf32>
    %25 = tpu.matmul %23, %24, %cst_16 {dimension_numbers = #tpu.dot_dimension_numbers<[1], [1], [0], [0], [0, 0, 1, 0], [], []>} : vector<1x32xbf16>, vector<8x32xbf16>, vector<1x8xf32> -> vector<1x8xf32>
    %c0_17 = arith.constant 0 : index
    %c0_18 = arith.constant 0 : index
    %26 = memref.load %arg7[%c0_17, %c0_18] : memref<1x1xf32, #tpu.memory_space<smem>>
    %27 = vector.broadcast %26 : f32 to vector<1x8xf32>
    %28 = arith.addf %25, %27 : vector<1x8xf32>
    %c0_19 = arith.constant 0 : index
    %c0_20 = arith.constant 0 : index
    %29 = vector.load %arg8[%c0_19, %c0_20] : memref<1x8xf32, #tpu.memory_space<vmem>>, vector<1x8xf32>
    tpu.vector_store %arg8[%c0_19, %c0_20], %28 {strides = array<i32>} : memref<1x8xf32, #tpu.memory_space<vmem>>, vector<1x8xf32>,
    return
  }
  func.func @transform_0(%arg0: i32) -> (i32, i32) {
    %c0_i32 = arith.constant 0 : i32
    %c0_i32_0 = arith.constant 0 : i32
    return %arg0, %c0_i32 : i32, i32
  }
  func.func @transform_1(%arg0: i32) -> (i32, i32) {
    %c0_i32 = arith.constant 0 : i32
    %c0_i32_0 = arith.constant 0 : i32
    %c0_i32_1 = arith.constant 0 : i32
    return %c0_i32, %c0_i32_0 : i32, i32
  }
  func.func @transform_2(%arg0: i32) -> (i32, i32) {
    %c0_i32 = arith.constant 0 : i32
    %c0_i32_0 = arith.constant 0 : i32
    %c0_i32_1 = arith.constant 0 : i32
    return %c0_i32, %c0_i32_0 : i32, i32
  }
  func.func @transform_3(%arg0: i32) -> (i32, i32) {
    %c0_i32 = arith.constant 0 : i32
    %c0_i32_0 = arith.constant 0 : i32
    %c0_i32_1 = arith.constant 0 : i32
    return %c0_i32, %c0_i32_0 : i32, i32
  }
  func.func @transform_4(%arg0: i32) -> (i32, i32) {
    %c0_i32 = arith.constant 0 : i32
    %c0_i32_0 = arith.constant 0 : i32
    %c0_i32_1 = arith.constant 0 : i32
    return %c0_i32, %c0_i32_0 : i32, i32
  }
  func.func @transform_5(%arg0: i32) -> (i32, i32) {
    %c0_i32 = arith.constant 0 : i32
    %c0_i32_0 = arith.constant 0 : i32
    %c0_i32_1 = arith.constant 0 : i32
    return %c0_i32, %c0_i32_0 : i32, i32
  }
  func.func @transform_6(%arg0: i32) -> (i32, i32) {
    %c0_i32 = arith.constant 0 : i32
    %c0_i32_0 = arith.constant 0 : i32
    %c0_i32_1 = arith.constant 0 : i32
    return %c0_i32, %c0_i32_0 : i32, i32
  }
  func.func @transform_7(%arg0: i32) -> (i32, i32) {
    %c0_i32 = arith.constant 0 : i32
    %c0_i32_0 = arith.constant 0 : i32
    return %c0_i32, %arg0 : i32, i32
  }
}

</mosaic_0001>

<bundles_post_ra>
// kernel: tpu_custom_call.1
= control target key start
LH: loop header
LB: loop body
LE: loop exit
PB: predicated region body
PF: predicated region fallthrough
CT: control target
= control target key end

     0   :  { %v406_v1 = vmov 0.0   ;;  %vm407_vm0 = vmmov 0   ;;  %s506_s0 = inlined_call_operand.vmem [shape: f32[8,128], index: 0, kind: input, shape index: {}]   ;;  %s507_s1 = inlined_call_operand.vmem [shape: bf16[128,64], index: 1, kind: input, shape index: {}]   ;;  %s508_s2 = inlined_call_operand.vmem [shape: f32[1,64], index: 2, kind: input, shape index: {}]   ;;  %s509_s3 = inlined_call_operand.vmem [shape: bf16[64,32], index: 3, kind: input, shape index: {}]   ;;  %s510_s4 = inlined_call_operand.vmem [shape: f32[1,32], index: 4, kind: input, shape index: {}]   ;;  %s511_s5 = inlined_call_operand.vmem [shape: bf16[1,32], index: 5, kind: input, shape index: {}]   ;;  %s512_s6 = inlined_call_operand.<no memory space> [shape: f32[1,1], index: 6, kind: input, shape index: {}]   ;;  %s513_s7 = inlined_call_operand.hbm [shape: f32[1,8], index: 7, kind: output, shape index: {}]  }
   0x1   :  { %v372_v0 = vld [vmem:[%s507_s1 + $0x38] sm:$0xff]   ;;  %331 = vmatprep.subr.bf16.mxu0 %v406_v1  ;;  %351 = vmatprep.subr.bf16.mxu1 %v406_v1  ;;  %v373_v2 = vld [vmem:[%s507_s1 + $0x30] sm:$0xff]   ;;  %v374_v3 = vld [vmem:[%s507_s1 + $0x28] sm:$0xff]  }
   0x2   :  { %332 = vmatpush3.bf16.msra.mxu0 %v372_v0  ;;  %347 = vmatprep.mubr.msk.bf16.mxu0 %vm407_vm0, %v406_v1  ;;  %v380_v4 = vld [vmem:[%s509_s3 + $0x18] sm:$0xff]   ;;  %v375_v5 = vld [vmem:[%s507_s1 + $0x20] sm:$0xff]   ;;  %v381_v6 = vld [vmem:[%s509_s3 + $0x10] sm:$0xff]  }
   0x3   :  { %333 = vmatprep.subr.bf16.mxu0 %v406_v1  ;;  %359 = vmatprep.mubr.msk.bf16.mxu1 %vm407_vm0, %v406_v1 }
   0x4   :  { %352 = vmatpush3.bf16.msra.mxu1 %v380_v4 }
   0x5   :  { %353 = vmatprep.subr.bf16.mxu1 %v406_v1 }
   0x6   :  { %334 = vmatpush3.bf16.msra.mxu0 %v373_v2 }
   0x7   :  { %335 = vmatprep.subr.bf16.mxu0 %v406_v1 }
   0xa   :  { %336 = vmatpush3.bf16.msra.mxu0 %v374_v3 }
   0xb   :  { %337 = vmatprep.subr.bf16.mxu0 %v406_v1 }
   0xc   :  { %13 = vsyncpa [#allocation4], 0  ;;  %v376_v7 = vld [vmem:[%s507_s1 + $0x18] sm:$0xff]   ;;  %354 = vmatpush3.bf16.msra.mxu1 %v381_v6  ;;  %v377_v8 = vld [vmem:[%s507_s1 + $0x10] sm:$0xff]   ;;  %vm185_vm2 = vcmask 523264   ;;  %vm236_vm4 = vcmask 261120   ;;  %v235_v35 = vstv %s512_s6 }
   0xd   :  { %355 = vmatprep.subr.bf16.mxu1 %v406_v1  ;;  %v378_v9 = vld [vmem:[%s507_s1 + $0x8] sm:$0xff]   ;;  %v379_v10 = vld [vmem:[%s507_s1] sm:$0xff]   ;;  %vm283_vm5 = vcmask 57344  }
   0xe   :  { %338 = vmatpush3.bf16.msra.mxu0 %v375_v5  ;;  %v29_v11 = vld [vmem:[%s506_s0] sm:$0xff]  ;;  %v382_v13 = vld [vmem:[%s509_s3 + $0x8] sm:$0xff]  }
   0xf   :  { %339 = vmatprep.subr.bf16.mxu0 %v406_v1  ;;  %v30_v12 = vpack.c.bf16 %v29_v11, %v29_v11  ;;  %v383_v14 = vld [vmem:[%s509_s3] sm:$0xff]  }
  0x10   :  { %356 = vmatpush3.bf16.msra.mxu1 %v382_v13  ;;  %v299_v15 = vld [vmem:[%s508_s2] ss:$0 sm:$0xff] }
  0x11   :  { %357 = vmatprep.subr.bf16.mxu1 %v406_v1  ;;  %v308_v24 = vld [vmem:[%s510_s4] ss:$0 sm:$0xff]  ;;  %s408_s4 = smov [#allocation3]  }
  0x12   :  { %340 = vmatpush3.bf16.msra.mxu0 %v376_v7  ;;  %v232_v34 = vld [vmem:[%s511_s5] sm:$0x1]  ;;  %s291_s8 = sshll.u32 %s408_s4, 4  ;;  %s292_s8 = int_to_ptr.vmem [resolvable:$true] %s291_s8 }
  0x13   :  { %341 = vmatprep.subr.bf16.mxu0 %v406_v1  ;;  %s384_s9 = scalar_lea.vmem %s292_s8, 16  ;;  %s388_s10 = scalar_lea.vmem %s292_s8, 32 }
  0x14   :  { %358 = vmatpush3.bf16.msra.mxu1 %v383_v14  ;;  %p385_p0 = scmp.ne.s32.totalorder %s292_s8, %s384_s9  ;;  %p389_p1 = scmp.lt.s32.totalorder %s292_s8, %s292_s8 }
  0x15   :  { %363 = vmatprep.subr.bf16.mxu1 %v406_v1  ;;  %p390_p2 = scmp.lt.s32.totalorder %s388_s10, %s384_s9 }
  0x16   :  { %342 = vmatpush3.bf16.msra.mxu0 %v377_v8 }
  0x17   :  { %343 = vmatprep.subr.bf16.mxu0 %v406_v1  ;;  %p391_p3 = por %p390_p2, %p389_p1 }
  0x19   :  { %p392_p4 = pnand %p391_p3, %p385_p0 }
  0x1a   :  { %344 = vmatpush3.bf16.msra.mxu0 %v378_v9 }
  0x1b   :  { %345 = vmatprep.subr.bf16.mxu0 %v406_v1 }
  0x1e   :  { %346 = vmatpush3.bf16.msra.mxu0 %v379_v10 }
  0x21   :  { %348 = vmatmul.mubr.bf16.vlgmr.msra.gmra.mxu0 %v30_v12 }
  0xe1   :  { %v136_v16 = vpop.f32.mrf.mxu0 }
  0xe2   :  { %v137_v17 = vadd.f32 %v299_v15, %v136_v16 }
  0xe3   :  { %v349_v18 = vpop.f32.mrf.mxu0 }
  0xe4   :  { %vm142_vm1 = vcmp.gt.f32.partialorder %v137_v17, 0.0  ;;  %v143_v19 = vmul.f32 0.01, %v137_v17 }
  0xe5   :  { %v139_v20 = vpop.f32.mrf.mxu0 }
  0xe6   :  { %v144_v21 = vsel %vm142_vm1, %v137_v17, %v143_v19 }
  0xe7   :  { %v145_v22 = vpack.c.bf16 %v144_v21, %v144_v21  ;;  %v350_v23 = vpop.f32.mrf.mxu0 }
  0xe9   :  { %360 = vmatmul.mubr.msk.bf16.vlgmr.msra.gmra.mxu1 %vm185_vm2, %v145_v22 }
  0xea   :  { %365 = vmatprep.mubr.msk.bf16.mxu1 %vm407_vm0, %v406_v1 }
 0x1a9   :  { %v223_v25 = vpop.f32.mrf.mxu1 }
 0x1aa   :  { %v224_v26 = vadd.f32 %v308_v24, %v223_v25 }
 0x1ab   :  { %v361_v27 = vpop.f32.mrf.mxu1 }
 0x1ac   :  { %vm229_vm3 = vcmp.gt.f32.partialorder %v224_v26, 0.0  ;;  %v230_v28 = vmul.f32 0.01, %v224_v26 }
 0x1ad   :  { %v226_v29 = vpop.f32.mrf.mxu1 }
 0x1ae   :  { %v231_v30 = vsel %vm229_vm3, %v224_v26, %v230_v28 }
 0x1af   :  { %v233_v31 = vpack.c.bf16 %v231_v30, %v231_v30  ;;  %v362_v32 = vpop.f32.mrf.mxu1 }
 0x1b1   :  { %v241_v33 = vsel %vm236_vm4, %v233_v31, 0 }
 0x1b2   :  { %364 = vmatpush3.bf16.xpose.msra.mxu1 %v241_v33 }
 0x1b9   :  { %366 = vmatmul.mubr.msk.bf16.vlgmr.msra.gmra.mxu1 %vm236_vm4, %v232_v34 }
 0x279   :  { %v277_v36 = vpop.f32.mrf.mxu1 }
 0x27a   :  { %v278_v37 = vadd.f32 %v277_v36, %v235_v35 }
 0x27b   :  { %v367_v38 = vpop.f32.mrf.mxu1 }
 0x27c   :  { %284 = vst.msk [vmem:[#allocation3] sm:$0x1] %vm283_vm5, %v278_v37 }
 0x27d   :  { %v280_v39 = vpop.f32.mrf.mxu1 }
 0x27e   :  { %395 = shalt.err (!%p392_p4)
}
 0x27f   :  { %294 = dma.vmem_to_hbm [thread:$0]  %s292_s8, 16, %s513_s7, [#allocation4]   ;;  %v368_v40 = vpop.f32.mrf.mxu1 }
 0x280   :  { %404 = dma.done.wait [#allocation4], 16  }
 0x281   :  { %405 = vsyncadd [#allocation4], 4294967280 }
 0x282   :  { %298 = vsyncpa [#allocation4], 1 }

</bundles_post_ra>
